<compile_context>
chip_gen: v7x
topology: tpu7x:2x2x1
jax: 0.10.0
libtpu: 0.0.40
codegen_flags: <defaults>
</compile_context>

<pallas_src>
import numpy as np
import jax
import jax.numpy as jnp
from jax import lax
from jax.experimental import pallas as pl
from jax.experimental.pallas import tpu as pltpu


def lstm_fc_kernel(tmax_ref,                      # SMEM (1,)     int32 : max(lengths)
                   x_ref,                         # VMEM (T*Bp, D) f32  (time-major, flattened)
                   len_ref,                       # VMEM (Bp, 1)  int32 (0 for padded rows)
                   wih0_ref, whh0_ref, b0_ref,    # (D,4H) (H,4H) (1,4H)  columns [i|f|o|g]
                   w1_ref, b1_ref,                # (2H,4H) (1,4H)        [Wih1; Whh1] stacked
                   wfc_ref, bfc_ref,              # (1,H)  (1,1)
                   out_ref,                       # VMEM (Bp, 1) f32
                   xw0_ref):                      # VMEM scratch (T*Bp, 4H) f32
    Bp = len_ref.shape[0]
    H = whh0_ref.shape[0]
    H3 = 3 * H
    tmax = tmax_ref[0]
    lens = len_ref[...]                           # (Bp, 1) int32

    # ---- hoisted: layer-0 input projection for all timesteps as ONE big matmul (b0 folded) ----
    xw0_ref[...] = (jnp.dot(x_ref[...], wih0_ref[...],
                            preferred_element_type=jnp.float32)
                    + b0_ref[...])

    # ---- hoisted loop invariants (no per-step broadcast_in_dim) ----
    b1b = jnp.broadcast_to(b1_ref[...], (Bp, 4 * H))           # (Bp, 4H)
    lens_h = jnp.broadcast_to(lens, (Bp, H))                   # (Bp, H) int32

    def gates(pre):                               # pre columns ordered [i | f | o | g]
        sig = jax.nn.sigmoid(pre[:, :H3])
        g = jnp.tanh(pre[:, H3:])
        return sig[:, 0:H], sig[:, H:2 * H], sig[:, 2 * H:H3], g

    def step(t, carry):
        h1, c1, h2, c2 = carry

        # layer 0: only the recurrent matmul remains inside the loop
        off = pl.multiple_of(t * Bp, Bp)
        pre1 = (xw0_ref[pl.ds(off, Bp), :]
                + jnp.dot(h1, whh0_ref[...], preferred_element_type=jnp.float32))
        i1, f1, o1, g1 = gates(pre1)
        c1n = f1 * c1 + i1 * g1
        h1n = o1 * jnp.tanh(c1n)

        # layer 1: single fused matmul over the concatenated state [h1_new | h2]
        hcat = jnp.concatenate([h1n, h2], axis=1)              # (Bp, 2H)
        pre2 = (jnp.dot(hcat, w1_ref[...], preferred_element_type=jnp.float32)
                + b1b)
        i2, f2, o2, g2 = gates(pre2)
        c2n = f2 * c2 + i2 * g2
        h2n = o2 * jnp.tanh(c2n)

        # packed-sequence masking: only rows with t < length advance their state
        active = t < lens_h                                    # (Bp, H) bool
        h1 = jnp.where(active, h1n, h1)
        c1 = jnp.where(active, c1n, c1)
        h2 = jnp.where(active, h2n, h2)
        c2 = jnp.where(active, c2n, c2)
        return h1, c1, h2, c2

    z = jnp.zeros((Bp, H), jnp.float32)
    _, _, h2, _ = lax.fori_loop(0, tmax, step, (z, z, z, z))

    # pad_packed_sequence output at t = tmax-1: h2 for rows with length == tmax, else 0 padding
    feat = jnp.where(lens == tmax, h2, 0.0)                    # (Bp, H)

    # FC head (output dim 1): VPU multiply + lane reduction; avoids an MXU round-trip with N=1
    out_ref[...] = (jnp.sum(feat * wfc_ref[...], axis=-1, keepdims=True)
                    + bfc_ref[...])


def lstm_forward(x, lengths, p):
    """x: (B, T, D) float32, lengths: (B,) int32. Returns (B, 1) float32."""
    B, T, D = x.shape
    H = p["whh0"].shape[1]                        # whh0: (4H, H)
    assert p["wfc"].shape[0] == 1, "FC head implemented for output_size == 1"

    Bp = ((B + 7) // 8) * 8                       # pad batch to the 8-sublane f32 tile

    x_tm = jnp.transpose(x, (1, 0, 2)).astype(jnp.float32)            # (T, B, D)
    x_tm = jnp.pad(x_tm, ((0, 0), (0, Bp - B), (0, 0)))               # (T, Bp, D)
    x2d = x_tm.reshape(T * Bp, D)                                     # time-major, flattened
    lens2d = jnp.pad(lengths.astype(jnp.int32), (0, Bp - B)).reshape(Bp, 1)
    tmax = jnp.max(lengths).astype(jnp.int32).reshape(1)

    def reorder(w):                               # [i|f|g|o] column blocks -> [i|f|o|g]
        return jnp.concatenate(
            [w[..., :2 * H], w[..., 3 * H:], w[..., 2 * H:3 * H]], axis=-1)

    wih0 = reorder(p["wih0"].T)                                        # (D, 4H)
    whh0 = reorder(p["whh0"].T)                                        # (H, 4H)
    b0 = reorder((p["bih0"] + p["bhh0"]).reshape(1, 4 * H))
    w1 = reorder(jnp.concatenate([p["wih1"].T, p["whh1"].T], axis=0))  # (2H, 4H)
    b1 = reorder((p["bih1"] + p["bhh1"]).reshape(1, 4 * H))
    wfc = p["wfc"].reshape(1, H)
    bfc = p["bfc"].reshape(1, 1)

    vmem = pl.BlockSpec(memory_space=pltpu.MemorySpace.VMEM)
    smem = pl.BlockSpec(memory_space=pltpu.MemorySpace.SMEM)

    out = pl.pallas_call(
        lstm_fc_kernel,
        out_shape=jax.ShapeDtypeStruct((Bp, 1), jnp.float32),
        in_specs=[smem, vmem, vmem,
                  vmem, vmem, vmem,
                  vmem, vmem,
                  vmem, vmem],
        out_specs=vmem,
        scratch_shapes=[pltpu.VMEM((T * Bp, 4 * H), jnp.float32)],
    )(tmax, x2d, lens2d, wih0, whh0, b0, w1, b1, wfc, bfc)
    return out[:B]


def reference_forward(x, lengths, p):
    """Pure-JAX reference with identical packed-sequence semantics (PyTorch gate order)."""
    B, T, D = x.shape
    H = p["whh0"].shape[1]
    tmax = int(np.max(np.asarray(lengths)))

    def cell(xt, h, c, wih, whh, bih, bhh):
        pre = xt @ wih.T + h @ whh.T + bih + bhh
        i = jax.nn.sigmoid(pre[:, :H])
        f = jax.nn.sigmoid(pre[:, H:2 * H])
        g = jnp.tanh(pre[:, 2 * H:3 * H])
        o = jax.nn.sigmoid(pre[:, 3 * H:])
        c = f * c + i * g
        h = o * jnp.tanh(c)
        return h, c

    h1 = c1 = h2 = c2 = jnp.zeros((B, H), jnp.float32)
    outs = []
    for t in range(T):
        h1n, c1n = cell(x[:, t], h1, c1, p["wih0"], p["whh0"], p["bih0"], p["bhh0"])
        h2n, c2n = cell(h1n, h2, c2, p["wih1"], p["whh1"], p["bih1"], p["bhh1"])
        m = (t < lengths)[:, None]
        h1 = jnp.where(m, h1n, h1); c1 = jnp.where(m, c1n, c1)
        h2 = jnp.where(m, h2n, h2); c2 = jnp.where(m, c2n, c2)
        outs.append(jnp.where(m, h2n, 0.0))
    feat = outs[tmax - 1]
    return feat @ p["wfc"].T + p["bfc"]


def init_params(key, input_size, hidden_size, output_size):
    """Deterministic init matching nn.LSTM / nn.Linear shapes (uniform +/- 1/sqrt(H))."""
    H, D = hidden_size, input_size
    bound = 1.0 / np.sqrt(H)
    names_shapes = [
        ("wih0", (4 * H, D)), ("whh0", (4 * H, H)), ("bih0", (4 * H,)), ("bhh0", (4 * H,)),
        ("wih1", (4 * H, H)), ("whh1", (4 * H, H)), ("bih1", (4 * H,)), ("bhh1", (4 * H,)),
        ("wfc", (output_size, H)), ("bfc", (output_size,)),
    ]
    keys = jax.random.split(key, len(names_shapes))
    return {n: jax.random.uniform(k, s, jnp.float32, minval=-bound, maxval=bound)
            for (n, s), k in zip(names_shapes, keys)}


if __name__ == "__main__":
    B, T, D, H, O = 4, 8, 16, 32, 1   # small shapes consistent with the module (hidden=32 stand-in for 50)
    key = jax.random.PRNGKey(0)
    kx, kp = jax.random.split(key)

    x = jax.random.normal(kx, (B, T, D), jnp.float32)
    lengths = jnp.array([T, 5, T, 3], jnp.int32)   # variable lengths, max == T
    params = init_params(kp, D, H, O)

    out = lstm_forward(x, lengths, params)
    out = jax.block_until_ready(out)

    ref = reference_forward(x, lengths, params)
    np.testing.assert_allclose(np.asarray(out), np.asarray(ref), rtol=1e-4, atol=1e-4)
    assert out.shape == (B, 1)

    print("KERNEL_OK")
</pallas_src>

<mosaic_0001>
module attributes {stable_mosaic.version = 11 : i64} {
  func.func @lstm_fc_kernel(%arg0: memref<1xi32, #tpu.memory_space<smem>>, %arg1: memref<64x16xf32, #tpu.memory_space<vmem>>, %arg2: memref<8x1xi32, #tpu.memory_space<vmem>>, %arg3: memref<16x128xf32, #tpu.memory_space<vmem>>, %arg4: memref<32x128xf32, #tpu.memory_space<vmem>>, %arg5: memref<1x128xf32, #tpu.memory_space<vmem>>, %arg6: memref<64x128xf32, #tpu.memory_space<vmem>>, %arg7: memref<1x128xf32, #tpu.memory_space<vmem>>, %arg8: memref<1x32xf32, #tpu.memory_space<vmem>>, %arg9: memref<1x1xf32, #tpu.memory_space<vmem>>, %arg10: memref<8x1xf32, #tpu.memory_space<vmem>>, %arg11: memref<64x128xf32, #tpu.memory_space<vmem>>) attributes {dimension_semantics = [], scalar_prefetch = 0 : i64, scratch_operands = 1 : i64, tpu.core_type = #tpu.core_type<tc>} {
    %c0 = arith.constant 0 : index
    %0 = memref.load %arg0[%c0] : memref<1xi32, #tpu.memory_space<smem>>
    %c0_0 = arith.constant 0 : index
    %c0_1 = arith.constant 0 : index
    %1 = vector.load %arg2[%c0_0, %c0_1] : memref<8x1xi32, #tpu.memory_space<vmem>>, vector<8x1xi32>
    %c0_2 = arith.constant 0 : index
    %c0_3 = arith.constant 0 : index
    %2 = vector.load %arg1[%c0_2, %c0_3] : memref<64x16xf32, #tpu.memory_space<vmem>>, vector<64x16xf32>
    %c0_4 = arith.constant 0 : index
    %c0_5 = arith.constant 0 : index
    %3 = vector.load %arg3[%c0_4, %c0_5] : memref<16x128xf32, #tpu.memory_space<vmem>>, vector<16x128xf32>
    %cst = arith.constant dense<0.000000e+00> : vector<64x128xf32>
    %4 = tpu.matmul %2, %3, %cst {dimension_numbers = #tpu.dot_dimension_numbers<[1], [0], [0], [1], [0, 0, 1, 1], [], []>} : vector<64x16xf32>, vector<16x128xf32>, vector<64x128xf32> -> vector<64x128xf32>
    %c0_6 = arith.constant 0 : index
    %c0_7 = arith.constant 0 : index
    %5 = vector.load %arg5[%c0_6, %c0_7] : memref<1x128xf32, #tpu.memory_space<vmem>>, vector<1x128xf32>
    %6 = vector.broadcast %5 : vector<1x128xf32> to vector<64x128xf32>
    %7 = arith.addf %4, %6 : vector<64x128xf32>
    %c0_8 = arith.constant 0 : index
    %c0_9 = arith.constant 0 : index
    %8 = vector.load %arg11[%c0_8, %c0_9] : memref<64x128xf32, #tpu.memory_space<vmem>>, vector<64x128xf32>
    tpu.vector_store %arg11[%c0_8, %c0_9], %7 {strides = array<i32>} : memref<64x128xf32, #tpu.memory_space<vmem>>, vector<64x128xf32>,
    %c0_10 = arith.constant 0 : index
    %c0_11 = arith.constant 0 : index
    %9 = vector.load %arg7[%c0_10, %c0_11] : memref<1x128xf32, #tpu.memory_space<vmem>>, vector<1x128xf32>
    %10 = vector.shape_cast %9 : vector<1x128xf32> to vector<1x128xf32>
    %11 = vector.broadcast %10 : vector<1x128xf32> to vector<8x128xf32>
    %12 = vector.shape_cast %1 : vector<8x1xi32> to vector<8x1xi32>
    %13 = vector.broadcast %12 : vector<8x1xi32> to vector<8x32xi32>
    %cst_12 = arith.constant 0.000000e+00 : f32
    %14 = vector.broadcast %cst_12 : f32 to vector<8x32xf32>
    %c0_i32 = arith.constant 0 : i32
    %15 = arith.subi %0, %c0_i32 : i32
    %16 = arith.addi %c0_i32, %15 : i32
    %c1_i32 = arith.constant 1 : i32
    %17:4 = scf.for %arg12 = %c0_i32 to %16 step %c1_i32 iter_args(%arg13 = %14, %arg14 = %14, %arg15 = %14, %arg16 = %14) -> (vector<8x32xf32>, vector<8x32xf32>, vector<8x32xf32>, vector<8x32xf32>)  : i32 {
      %c8_i32 = arith.constant 8 : i32
      %33 = arith.muli %arg12, %c8_i32 : i32
      %34 = tpu.assume_multiple %33, 8 : i32
      %35 = arith.index_cast %34 : i32 to index
      %c0_21 = arith.constant 0 : index
      %36 = vector.load %arg11[%35, %c0_21] : memref<64x128xf32, #tpu.memory_space<vmem>>, vector<8x128xf32>
      %c0_22 = arith.constant 0 : index
      %c0_23 = arith.constant 0 : index
      %37 = vector.load %arg4[%c0_22, %c0_23] : memref<32x128xf32, #tpu.memory_space<vmem>>, vector<32x128xf32>
      %cst_24 = arith.constant dense<0.000000e+00> : vector<8x128xf32>
      %38 = tpu.matmul %arg13, %37, %cst_24 {dimension_numbers = #tpu.dot_dimension_numbers<[1], [0], [0], [1], [0, 0, 1, 1], [], []>} : vector<8x32xf32>, vector<32x128xf32>, vector<8x128xf32> -> vector<8x128xf32>
      %39 = arith.addf %36, %38 : vector<8x128xf32>
      %40 = vector.extract_strided_slice %39 {offsets = [0, 0], sizes = [8, 96], strides = [1, 1]} : vector<8x128xf32> to vector<8x96xf32>
      %41 = arith.negf %40 : vector<8x96xf32>
      %42 = math.exp %41 : vector<8x96xf32>
      %cst_25 = arith.constant 1.000000e+00 : f32
      %43 = vector.broadcast %cst_25 : f32 to vector<8x96xf32>
      %44 = arith.addf %43, %42 : vector<8x96xf32>
      %45 = arith.divf %43, %44 : vector<8x96xf32>
      %46 = vector.extract_strided_slice %39 {offsets = [0, 96], sizes = [8, 32], strides = [1, 1]} : vector<8x128xf32> to vector<8x32xf32>
      %47 = math.tanh %46 : vector<8x32xf32>
      %48 = vector.extract_strided_slice %45 {offsets = [0, 0], sizes = [8, 32], strides = [1, 1]} : vector<8x96xf32> to vector<8x32xf32>
      %49 = vector.extract_strided_slice %45 {offsets = [0, 32], sizes = [8, 32], strides = [1, 1]} : vector<8x96xf32> to vector<8x32xf32>
      %50 = vector.extract_strided_slice %45 {offsets = [0, 64], sizes = [8, 32], strides = [1, 1]} : vector<8x96xf32> to vector<8x32xf32>
      %51 = arith.mulf %49, %arg14 : vector<8x32xf32>
      %52 = arith.mulf %48, %47 : vector<8x32xf32>
      %53 = arith.addf %51, %52 : vector<8x32xf32>
      %54 = math.tanh %53 : vector<8x32xf32>
      %55 = arith.mulf %50, %54 : vector<8x32xf32>
      %56 = tpu.concatenate %55, %arg15 in 1 : vector<8x32xf32>, vector<8x32xf32> -> vector<8x64xf32>
      %c0_26 = arith.constant 0 : index
      %c0_27 = arith.constant 0 : index
      %57 = vector.load %arg6[%c0_26, %c0_27] : memref<64x128xf32, #tpu.memory_space<vmem>>, vector<64x128xf32>
      %cst_28 = arith.constant dense<0.000000e+00> : vector<8x128xf32>
      %58 = tpu.matmul %56, %57, %cst_28 {dimension_numbers = #tpu.dot_dimension_numbers<[1], [0], [0], [1], [0, 0, 1, 1], [], []>} : vector<8x64xf32>, vector<64x128xf32>, vector<8x128xf32> -> vector<8x128xf32>
      %59 = arith.addf %58, %11 : vector<8x128xf32>
      %60 = vector.extract_strided_slice %59 {offsets = [0, 0], sizes = [8, 96], strides = [1, 1]} : vector<8x128xf32> to vector<8x96xf32>
      %61 = arith.negf %60 : vector<8x96xf32>
      %62 = math.exp %61 : vector<8x96xf32>
      %cst_29 = arith.constant 1.000000e+00 : f32
      %63 = vector.broadcast %cst_29 : f32 to vector<8x96xf32>
      %64 = arith.addf %63, %62 : vector<8x96xf32>
      %65 = arith.divf %63, %64 : vector<8x96xf32>
      %66 = vector.extract_strided_slice %59 {offsets = [0, 96], sizes = [8, 32], strides = [1, 1]} : vector<8x128xf32> to vector<8x32xf32>
      %67 = math.tanh %66 : vector<8x32xf32>
      %68 = vector.extract_strided_slice %65 {offsets = [0, 0], sizes = [8, 32], strides = [1, 1]} : vector<8x96xf32> to vector<8x32xf32>
      %69 = vector.extract_strided_slice %65 {offsets = [0, 32], sizes = [8, 32], strides = [1, 1]} : vector<8x96xf32> to vector<8x32xf32>
      %70 = vector.extract_strided_slice %65 {offsets = [0, 64], sizes = [8, 32], strides = [1, 1]} : vector<8x96xf32> to vector<8x32xf32>
      %71 = arith.mulf %69, %arg16 : vector<8x32xf32>
      %72 = arith.mulf %68, %67 : vector<8x32xf32>
      %73 = arith.addf %71, %72 : vector<8x32xf32>
      %74 = math.tanh %73 : vector<8x32xf32>
      %75 = arith.mulf %70, %74 : vector<8x32xf32>
      %76 = vector.broadcast %arg12 : i32 to vector<8x32xi32>
      %77 = arith.cmpi slt, %76, %13 : vector<8x32xi32>
      %78 = arith.select %77, %55, %arg13 : vector<8x32xi1>, vector<8x32xf32>
      %79 = arith.select %77, %53, %arg14 : vector<8x32xi1>, vector<8x32xf32>
      %80 = arith.select %77, %75, %arg15 : vector<8x32xi1>, vector<8x32xf32>
      %81 = arith.select %77, %73, %arg16 : vector<8x32xi1>, vector<8x32xf32>
      scf.yield %78, %79, %80, %81 : vector<8x32xf32>, vector<8x32xf32>, vector<8x32xf32>, vector<8x32xf32>
    }
    %18 = vector.broadcast %0 : i32 to vector<8x1xi32>
    %19 = arith.cmpi eq, %1, %18 : vector<8x1xi32>
    %cst_13 = arith.constant 0.000000e+00 : f32
    %20 = vector.shape_cast %19 : vector<8x1xi1> to vector<8x1xi1>
    %21 = vector.broadcast %20 : vector<8x1xi1> to vector<8x32xi1>
    %22 = vector.broadcast %cst_13 : f32 to vector<8x32xf32>
    %23 = arith.select %21, %17#2, %22 : vector<8x32xi1>, vector<8x32xf32>
    %c0_14 = arith.constant 0 : index
    %c0_15 = arith.constant 0 : index
    %24 = vector.load %arg8[%c0_14, %c0_15] : memref<1x32xf32, #tpu.memory_space<vmem>>, vector<1x32xf32>
    %25 = vector.broadcast %24 : vector<1x32xf32> to vector<8x32xf32>
    %26 = arith.mulf %23, %25 : vector<8x32xf32>
    %cst_16 = arith.constant dense<0.000000e+00> : vector<8xf32>
    %27 = vector.multi_reduction <add>, %26, %cst_16 [1] : vector<8x32xf32> to vector<8xf32>
    %28 = vector.shape_cast %27 : vector<8xf32> to vector<8x1xf32>
    %c0_17 = arith.constant 0 : index
    %c0_18 = arith.constant 0 : index
    %29 = vector.load %arg9[%c0_17, %c0_18] : memref<1x1xf32, #tpu.memory_space<vmem>>, vector<1x1xf32>
    %30 = vector.broadcast %29 : vector<1x1xf32> to vector<8x1xf32>
    %31 = arith.addf %28, %30 : vector<8x1xf32>
    %c0_19 = arith.constant 0 : index
    %c0_20 = arith.constant 0 : index
    %32 = vector.load %arg10[%c0_19, %c0_20] : memref<8x1xf32, #tpu.memory_space<vmem>>, vector<8x1xf32>
    tpu.vector_store %arg10[%c0_19, %c0_20], %31 {strides = array<i32>} : memref<8x1xf32, #tpu.memory_space<vmem>>, vector<8x1xf32>,
    return
  }
}

</mosaic_0001>

<bundles_post_ra>
// kernel: tpu_custom_call.1
= control target key start
LH: loop header
LB: loop body
LE: loop exit
PB: predicated region body
PF: predicated region fallthrough
CT: control target
= control target key end

     0   :  { %vm57_vm0 = vcmask 130048   ;;  %v737_v4 = vmov 0   ;;  %v861_v33 = vmov 0.0   ;;  %s997_s0 = inlined_call_operand.<no memory space> [shape: s32[1], index: 0, kind: input, shape index: {}]   ;;  %s998_s3 = inlined_call_operand.vmem [shape: f32[16,128], index: 3, kind: input, shape index: {}]   ;;  %s999_s4 = inlined_call_operand.vmem [shape: f32[32,128], index: 4, kind: input, shape index: {}]   ;;  %s1000_s6 = inlined_call_operand.vmem [shape: f32[64,128], index: 6, kind: input, shape index: {}]   ;;  %s1001_s8 = inlined_call_operand.vmem [shape: f32[1,32], index: 8, kind: input, shape index: {}]   ;;  %s1002_s9 = inlined_call_operand.<no memory space> [shape: f32[1,1], index: 9, kind: input, shape index: {}]   ;;  %s1003_s10 = inlined_call_operand.vmem [shape: f32[8,1], index: 10, kind: output, shape index: {}]   ;;  %s1004_s1 = inlined_call_operand.vmem [shape: f32[64,16], index: 1, kind: input, shape index: {}]   ;;  %s1005_s2 = inlined_call_operand.vmem [shape: s32[8,1], index: 2, kind: input, shape index: {}]   ;;  %s1006_s7 = inlined_call_operand.vmem [shape: f32[1,128], index: 7, kind: input, shape index: {}]   ;;  %s1007_s5 = inlined_call_operand.vmem [shape: f32[1,128], index: 5, kind: input, shape index: {}]  }
   0x1   :  { %v16_v0 = vstv %s1002_s9  ;;  %v48_v1 = vld [vmem:[%s998_s3] sm:$0xff]  ;;  %v49_v2 = vld [vmem:[%s998_s3 + $0x8] sm:$0xff]  ;;  %671 = vset.pattern.permute.xlu0 %v737_v4  ;;  %v42_v10 = vld [vmem:[%s1004_s1 + $0x10] sm:$0xff]  ;;  %p513_p0 = scmp.le.s32.totalorder %s997_s0, 0 }
   0x2   :  { %v40_v3 = vld [vmem:[%s1004_s1] sm:$0xff]  ;;  %17 = vst [vmem:[#allocation4] sm:$0x1] %v16_v0  ;;  %v591_v5 = vpack.c.bf16 %v49_v2, %v48_v1  ;;  %v41_v8 = vld [vmem:[%s1004_s1 + $0x8] sm:$0xff]  ;;  %v46_v11 = vld [vmem:[%s1004_s1 + $0x30] sm:$0xff]  ;;  %v863_v34 = vmov (!%p513_p0), 0.0  }
   0x3   :  { %549 = vmatprep.mubr.msk.f32.mxu0 %vm57_vm0, %v40_v3  ;;  %v44_v6 = vld [vmem:[%s1004_s1 + $0x20] sm:$0xff]  ;;  %v45_v9 = vld [vmem:[%s1004_s1 + $0x28] sm:$0xff]  ;;  %v43_v12 = vld [vmem:[%s1004_s1 + $0x18] sm:$0xff]  ;;  %v865_v35 = vmov (!%p513_p0), 0.0   ;;  %v867_v36 = vmov (!%p513_p0), 0.0   ;;  %v869_v37 = vmov (!%p513_p0), 0.0  }
   0x4   :  { %555 = vmatprep.mubr.msk.f32.mxu1 %vm57_vm0, %v44_v6  ;;  %592 = vmatprep.subr.bf16.mxu0 %v591_v5  ;;  %v821_v7 = vld [vmem:[%s1005_s2] sm:$0xff]  ;;  %v47_v13 = vld [vmem:[%s1004_s1 + $0x38] sm:$0xff] }
   0x5   :  { %613 = vmatprep.subr.bf16.mxu1 %v591_v5  ;;  %594 = vmatpush3.bf16.msra.mxu0 %v591_v5  ;;  %v851_v14 = vld [vmem:[%s1006_s7] ss:$0 sm:$0xff]  ;;  %s871_s7 = smov (!%p513_p0), 0  }
   0x6   :  { %614 = vmatpush3.bf16.msra.mxu1 %v591_v5  ;;  %203 = vperm.xlu0 %671, %v821_v7   ;;  %v503_v16 = vld [vmem:[%s1007_s5] ss:$0 sm:$0xff] }
   0x8   :  { %550 = vmatmul.mubr.msk.f32.vlgmr.msra.gmra.mrb[0].mxu0 %vm57_vm0, %v41_v8 }
   0x9   :  { %556 = vmatmul.mubr.msk.f32.vlgmr.msra.gmra.mrb[0].mxu1 %vm57_vm0, %v45_v9  ;;  %552 = vmatprep.mubr.msk.f32.mxu0 %vm57_vm0, %v42_v10 }
   0xa   :  { %558 = vmatprep.mubr.msk.f32.mxu1 %vm57_vm0, %v46_v11 }
   0xc   :  { %553 = vmatmul.mubr.msk.f32.gmra.mrb[2].mxu0 %vm57_vm0, %v43_v12 }
   0xd   :  { %559 = vmatmul.mubr.msk.f32.gmra.mrb[2].mxu1 %vm57_vm0, %v47_v13 }
  0x85   :  { %v853_v15 = vpop.permute.xlu0 %203 }
  0xdb   :  { %v551_v17 = vpop.f32.mrb[0].mxu0 }
  0xdc   :  { %v557_v18 = vpop.f32.mrb[0].mxu1  ;;  %v154_v19 = vadd.f32 %v551_v17, %v503_v16  ;;  %v148_v21 = vpop.f32.mrb[1].mxu0 }
  0xdd   :  { %v174_v20 = vadd.f32 %v557_v18, %v503_v16  ;;  %v168_v22 = vpop.f32.mrb[1].mxu1  ;;  %v149_v23 = vadd.f32 %v503_v16, %v148_v21 }
  0xde   :  { %v169_v24 = vadd.f32 %v503_v16, %v168_v22  ;;  %188 = vst [vmem:[#allocation2 + $0x8] sm:$0xff] %v154_v19  ;;  %492 = sbr.rel (%p513_p0) target bundleno = 1638 (0x666), region = 62 }
  0xdf   :  { %192 = vst [vmem:[#allocation2 + $0x28] sm:$0xff] %v174_v20  ;;  %187 = vst [vmem:[#allocation2] sm:$0xff] %v149_v23  ;;  %v554_v25 = vpop.f32.mrb[2].mxu0 }
  0xe0   :  { %191 = vst [vmem:[#allocation2 + $0x20] sm:$0xff] %v169_v24  ;;  %v560_v26 = vpop.f32.mrb[2].mxu1  ;;  %v164_v27 = vadd.f32 %v554_v25, %v503_v16  ;;  %v158_v29 = vpop.f32.mrb[3].mxu0 }
  0xe1   :  { %v184_v28 = vadd.f32 %v560_v26, %v503_v16  ;;  %v178_v30 = vpop.f32.mrb[3].mxu1  ;;  %v159_v31 = vadd.f32 %v503_v16, %v158_v29 }
  0xe2   :  { %v179_v32 = vadd.f32 %v503_v16, %v178_v30  ;;  %190 = vst [vmem:[#allocation2 + $0x18] sm:$0xff] %v164_v27 }
  0xe3   :  { %194 = vst [vmem:[#allocation2 + $0x38] sm:$0xff] %v184_v28  ;;  %189 = vst [vmem:[#allocation2 + $0x10] sm:$0xff] %v159_v31 }
  0xe4   :  { %193 = vst [vmem:[#allocation2 + $0x30] sm:$0xff] %v179_v32 }
  0xe5 LB: > { %v218_v38 = vld [vmem:[%s999_s4] sm:$0xff]  ;;  %v219_v39 = vld [vmem:[%s999_s4 + $0x8] sm:$0xff]  ;;  %v220_v40 = vld [vmem:[%s999_s4 + $0x10] sm:$0xff]  ;;  %v738_v41 = vmov 0.0|0.0   ;;  %s739_s24 = smov 64   ;;  %vm740_vm1 = vmmov 0   ;;  %v438_v58 = vstv %s731_s7  ;;  %s731_s7 = sphi %s871_s7, %s208_s7   ;;  %v727_v37 = vphi %v869_v37, %v440_v37   ;;  %v723_v36 = vphi %v867_v36, %v441_v36   ;;  %v719_v35 = vphi %v865_v35, %v1010_v35   ;;  %v715_v34 = vphi %v863_v34, %v443_v34  }
  0xe6   : > { %595 = vmatprep.subr.bf16.mxu0 %v738_v41  ;;  %v596_v42 = vpack.c.bf16 %v219_v39, %v218_v38  ;;  %v221_v43 = vld [vmem:[%s999_s4 + $0x18] sm:$0xff]  ;;  %601 = vmatprep.subr.bf16.mxu1 %v738_v41  ;;  %v741_v44 = vmov 0.0   ;;  %vm225_vm2 = vcmask 261120   ;;  %s514_s25 = sshll.u32 %s731_s7, 3  ;;  %s742_s27 = smov 32   ;;  %vm912_vm3 = vcmp.lt.s32.totalorder %v438_v58, %v853_v15  ;;  %v332_v63 = vld [vmem:[%s1000_s6] sm:$0xff] }
  0xe7   : > { %223 = vrot.lane.b32.xlu0 %v727_v37, %s739_s24  ;;  %569 = vmatprep.mubr.msk.f32.mxu0 %vm740_vm1, %v741_v44  ;;  %v599_v45 = vpack.c.bf16 %v221_v43, %v220_v40  ;;  %s216_s26 = scalar_lea.vmem [#allocation2], %s514_s25  ;;  %v333_v0 = vld [vmem:[%s1000_s6 + $0x8] sm:$0xff]  ;;  %v334_v1 = vld [vmem:[%s1000_s6 + $0x10] sm:$0xff]  ;;  %v335_v3 = vld [vmem:[%s1000_s6 + $0x18] sm:$0xff]  ;;  %s743_s9 = smov 96   ;;  %vm340_vm4 = vcmask 523264  }
  0xe8   : > { %597 = vmatpush3.bf16.msra.mxu0 %v596_v42  ;;  %588 = vmatprep.mubr.msk.f32.mxu1 %vm740_vm1, %v741_v44  ;;  %v602_v2 = vpack.c.bf16 %v333_v0, %v332_v63  ;;  %v605_v5 = vpack.c.bf16 %v335_v3, %v334_v1  ;;  %v336_v6 = vld [vmem:[%s1000_s6 + $0x20] sm:$0xff]  ;;  %v337_v8 = vld [vmem:[%s1000_s6 + $0x28] sm:$0xff]  ;;  %v338_v10 = vld [vmem:[%s1000_s6 + $0x30] sm:$0xff]  ;;  %s208_s7 = sadd.s32 1, %s731_s7  }
  0xe9   : > { %598 = vmatprep.subr.bf16.mxu0 %v738_v41  ;;  %v608_v9 = vpack.c.bf16 %v337_v8, %v336_v6  ;;  %v339_v11 = vld [vmem:[%s1000_s6 + $0x38] sm:$0xff]  ;;  %p207_p1 = scmp.ge.s32.totalorder %s208_s7, %s997_s0 }
  0xea   : > { %603 = vmatpush3.bf16.msra.mxu1 %v602_v2  ;;  %v611_v13 = vpack.c.bf16 %v339_v11, %v338_v10 }
  0xeb   : > { %v217_v47 = vld [vmem:[%s216_s26] sm:$0xff]  ;;  %604 = vmatprep.subr.bf16.mxu1 %v738_v41 }
  0xec   : > { %600 = vmatpush3.bf16.msra.mxu0 %v599_v45 }
  0xee   : > { %606 = vmatpush3.bf16.msra.mxu1 %v605_v5 }
  0xef   : > { %607 = vmatprep.subr.bf16.mxu1 %v738_v41 }
  0xf2   : > { %609 = vmatpush3.bf16.msra.mxu1 %v608_v9 }
  0xf3   : > { %610 = vmatprep.subr.bf16.mxu1 %v738_v41 }
  0xf6   : > { %612 = vmatpush3.bf16.msra.mxu1 %v611_v13 }
 0x159   : > { %v224_v46 = vpop.permute.xlu0 %223 }
 0x15a   : > { %570 = vmatmul.mubr.msk.f32.vlgmr.msra.gmra.mrb[0].mxu0 %vm225_vm2, %v224_v46 }
 0x22d   : > { %v294_v48 = vpop.f32.mrb[0].mxu0 }
 0x22e   : > { %v298_v49 = vadd.f32 %v294_v48, %v217_v47  ;;  %v571_v50 = vpop.f32.mrb[1].mxu0 }
 0x230   : > { %672 = vtanh.f32 %v298_v49  ;;  %v516_v52 = vmul.f32 -1.442695, %v298_v49 }
 0x232   : > { %674 = vpow2.f32 %v516_v52 }
 0x23a   : > { %v673_v51 = vpop.eup %672 }
 0x23b   : > { %308 = vrot.lane.b32.xlu0 %v673_v51, %s742_s27 }
 0x23c   : > { %v675_v53 = vpop.eup %674 }
 0x23d   : > { %v302_v54 = vadd.f32 1.0, %v675_v53 }
 0x23f   : > { %676 = vrcp.f32 %v302_v54 }
 0x249   : > { %v677_v55 = vpop.eup %676 }
 0x24a   : > { %v306_v59 = vmul.f32 %v723_v36, %v677_v55 }
 0x2ad   : > { %v309_v56 = vpop.permute.xlu0 %308 }
 0x2ae   : > { %v311_v57 = vmul.f32 %v677_v55, %v309_v56 }
 0x2b0   : > { %313 = vrot.lane.b32.xlu1 %v311_v57, %s742_s27 }
 0x322   : > { %v314_v61 = vpop.permute.xlu1 %313 }
 0x323   : > { %v916_v62 = vadd.f32 %v314_v61, %v306_v59 }
 0x325   : > { %678 = vtanh.f32 %v916_v62  ;;  %v441_v36 = vsel %vm912_vm3, %v916_v62, %v723_v36  }
 0x32f   : > { %v679_v12 = vpop.eup %678 }
 0x330   : > { %319 = vrot.lane.b32.xlu1 %v679_v12, %s742_s27 }
 0x334   : > { %328 = vrot.lane.b32.xlu1 %v719_v35, %s743_s9 }
 0x3a2   : > { %v320_v16 = vpop.permute.xlu1 %319 }
 0x3a3   : > { %v322_v17 = vmul.f32 %v677_v55, %v320_v16 }
 0x3a5   : > { %v440_v37 = vsel %vm912_vm3, %v322_v17, %v727_v37   ;;  %324 = vrot.lane.b32.xlu0 %v322_v17, %s739_s24 }
 0x3a6   : > { %v329_v18 = vpop.permute.xlu1 %328 }
 0x417   : > { %v325_v19 = vpop.permute.xlu0 %324 }
 0x418   : > { %v331_v20 = vsel %vm225_vm2, %v325_v19, %v329_v18 }
 0x419   : > { %589 = vmatmul.mubr.msk.f32.vlgmr.msra.gmra.mrb[0].mxu1 %vm340_vm4, %v331_v20 }
 0x4ec   : > { %v410_v21 = vpop.f32.mrb[0].mxu1 }
 0x4ed   : > { %v411_v22 = vadd.f32 %v851_v14, %v410_v21  ;;  %v590_v23 = vpop.f32.mrb[1].mxu1 }
 0x4ef   : > { %680 = vtanh.f32 %v411_v22  ;;  %v518_v25 = vmul.f32 -1.442695, %v411_v22 }
 0x4f1   : > { %682 = vpow2.f32 %v518_v25 }
 0x4f9   : > { %v681_v24 = vpop.eup %680 }
 0x4fa   : > { %423 = vrot.lane.b32.xlu0 %v681_v24, %s742_s27 }
 0x4fb   : > { %v683_v26 = vpop.eup %682 }
 0x4fc   : > { %v417_v27 = vadd.f32 1.0, %v683_v26 }
 0x4fe   : > { %684 = vrcp.f32 %v417_v27 }
 0x508   : > { %v685_v28 = vpop.eup %684 }
 0x509   : > { %v421_v31 = vmul.f32 %v715_v34, %v685_v28 }
 0x56c   : > { %v424_v29 = vpop.permute.xlu0 %423 }
 0x56d   : > { %v426_v30 = vmul.f32 %v685_v28, %v424_v29 }
 0x56f   : > { %428 = vrot.lane.b32.xlu1 %v426_v30, %s742_s27 }
 0x5e1   : > { %v429_v32 = vpop.permute.xlu1 %428 }
 0x5e2   : > { %v431_v33 = vadd.f32 %v429_v32, %v421_v31 }
 0x5e4   : > { %686 = vtanh.f32 %v431_v33  ;;  %v443_v34 = vsel %vm912_vm3, %v431_v33, %v715_v34  }
 0x5ee   : > { %v687_v38 = vpop.eup %686 }
 0x5ef   : > { %434 = vrot.lane.b32.xlu0 %v687_v38, %s742_s27 }
 0x65f   :  { %210 = sbr.rel (!%p207_p1) target bundleno = 229 (0xe5), region = 68 }
 0x661   : > { %v435_v39 = vpop.permute.xlu0 %434 }
 0x662   : > { %v437_v40 = vmul.f32 %v685_v28, %v435_v39 }
 0x664   : > { %v442_v41 = vsel %vm912_vm3, %v437_v40, %v719_v35  }
 0x665   : > { %v1010_v35 = vmov %v442_v41  ;;  %v1011_v33 = vmov (%p207_p1), %v442_v41 }
 0x666 PF:  { %688 = vset.pattern.permute.xlu0 %v737_v4  ;;  %v444_v42 = vstv %s997_s0  ;;  %v519_v14 = vld [vmem:[%s1001_s8] ss:$0 sm:$0xff]  ;;  %s744_s4 = smov 64   ;;  %vm466_vm7 = vcmask 261120   ;;  %vm478_vm8 = vcmask 7168   ;;  %v735_v33 = vphi %v861_v33, %v1011_v33  }
 0x667   :  { %vm445_vm5 = vcmp.eq.s32.totalorder %v821_v7, %v444_v42  ;;  %v520_v7 = vld [vmem:[#allocation4] ss:$0 sm:$0xff] }
 0x668   :  { %v446_v43 = vsel %vm445_vm5, 1, %v737_v4 }
 0x669   :  { %448 = vperm.xlu0 %688, %v446_v43  }
 0x66d   :  { %458 = vrot.lane.b32.xlu0 %v519_v14, %s744_s4 }
 0x6e8   :  { %v449_v15 = vpop.permute.xlu0 %448 }
 0x6e9   :  { %vm450_vm6 = vcmp.eq.s32.totalorder %v449_v15, 1 }
 0x6ea   :  { %v451_v34 = vsel %vm450_vm6, %v735_v33, 0.0 }
 0x6ec   :  { %v459_v35 = vpop.permute.xlu0 %458 }
 0x6ed   :  { %v461_v36 = vmul.f32 %v459_v35, %v451_v34 }
 0x6ef   :  { %463 = vrot.lane.b32.xlu1 %v461_v36, %s744_s4 }
 0x761   :  { %v464_v37 = vpop.permute.xlu1 %463 }
 0x762   :  { %v467_v44 = vsel %vm466_vm7, %v464_v37, 0.0 }
 0x763   :  { %468 = vadd.xlane.f32.xlu1 %v467_v44 }
 0x7f0   :  { %v469_v4 = vpop.xlane.xlu1 %468 }
 0x7f1   :  { %v477_v45 = vadd.f32 %v520_v7, %v469_v4 }
 0x7f3   :  { %479 = vst.msk [vmem:[%s1003_s10] sm:$0xff] %vm478_vm8, %v477_v45 }

</bundles_post_ra>
